<compile_context>
chip_gen: v6e
topology: v6e:2x2x1
jax: 0.10.0
libtpu: 0.0.40
codegen_flags: <defaults>
</compile_context>

<pallas_src>
import functools

import jax
import jax.numpy as jnp
from jax.experimental import pallas as pl
from jax.experimental.pallas import tpu as pltpu

NEG_SLOPE = 0.01      # torch.nn.functional.leaky_relu default
SUBLANE = 8
LANE = 128
MAX_TB = 1024         # per-step batch-tile cap (v6e likes 1024+, v7x cap ~1024)
MIN_SPLIT_B = 64      # once B >= this, force >=2 grid steps (v7x megacore)
IN_PAD = 16           # layer-0 K pad: one bf16 sublane tile (F=6 -> 16 lanes)


def _round_up(x, m):
    return ((x + m - 1) // m) * m


def _cdiv(a, b):
    return -(-a // b)


def _leaky_relu(x):
    return jnp.where(x >= 0, x, NEG_SLOPE * x)


def _relu(x):
    return jnp.maximum(x, 0.0)


def mlp_kernel(x_ref,
               w0_ref, b0_ref, w1_ref, b1_ref, w2_ref, b2_ref,
               w3_ref, b3_ref, w4_ref, b4_ref, w5_ref, b5_ref,
               o_ref):
    """Whole 6-layer MLP fused; one batch tile per grid step."""

    def lin(h_bf16, w_ref, b_ref):
        # bf16 operands feed the MXU natively; accumulate in f32, bias in f32.
        return jnp.dot(h_bf16, w_ref[...],
                       preferred_element_type=jnp.float32) + b_ref[...]

    h = x_ref[...]                                                # (TB, 16) bf16
    h = _leaky_relu(lin(h, w0_ref, b0_ref)).astype(jnp.bfloat16)  # 6   -> 45  (16  -> 128)
    h = _leaky_relu(lin(h, w1_ref, b1_ref)).astype(jnp.bfloat16)  # 45  -> 90  (128 -> 128)
    h = _relu(lin(h, w2_ref, b2_ref)).astype(jnp.bfloat16)        # 90  -> 135 (128 -> 256)
    h = _relu(lin(h, w3_ref, b3_ref)).astype(jnp.bfloat16)        # 135 -> 90  (256 -> 128)
    h = _leaky_relu(lin(h, w4_ref, b4_ref)).astype(jnp.bfloat16)  # 90  -> 45  (128 -> 128)
    y = lin(h, w5_ref, b5_ref)                                    # 45  -> out (128 -> 8)
    o_ref[...] = y.astype(o_ref.dtype)                            # bf16 writeback


def pad_params(params):
    """Pad each (W, b) once, outside the hot path.

    Layer l's padded input width equals layer l-1's padded output width.
    Layer 0's K pads only to IN_PAD (16); hidden widths pad to a multiple of
    128 lanes; the final output pads only to a sublane multiple (8).
    W: (in, out) f32 -> bf16 padded.  b: (out,) f32 -> (1, out_pad) f32.
    """
    # Zero padding is exact only because relu(0) == leaky_relu(0) == 0.
    assert NEG_SLOPE * 0.0 == 0.0 and max(0.0, 0.0) == 0.0
    n_layers = len(params)
    flat = []
    for l, (w, b) in enumerate(params):
        ki, ko = w.shape
        kip = IN_PAD if l == 0 else _round_up(ki, LANE)
        kop = (_round_up(ko, SUBLANE) if l == n_layers - 1
               else _round_up(ko, LANE))
        wp = jnp.zeros((kip, kop), jnp.bfloat16).at[:ki, :ko].set(
            w.astype(jnp.bfloat16))
        bp = jnp.zeros((1, kop), jnp.float32).at[:, :ko].set(b)
        flat.append(wp)
        flat.append(bp)
    return tuple(flat)


@functools.partial(jax.jit, static_argnames=("n_output",))
def mlp_forward(x, padded_params, n_output):
    """x: (B, n_feature) f32.  padded_params: output of pad_params()."""
    B, F = x.shape
    Fp = padded_params[0].shape[0]      # padded input width   (16)
    Op = padded_params[-2].shape[1]     # padded output width  (8)

    # Balanced batch tiles: minimal padding for awkward B, capped at MAX_TB,
    # and >=2 tiles once B >= MIN_SPLIT_B so the "parallel" grid axis shards
    # across both TensorCores on v7x.
    n_tiles = _cdiv(B, MAX_TB)
    if B >= MIN_SPLIT_B:
        n_tiles = max(n_tiles, 2)
    TB = _round_up(_cdiv(B, n_tiles), SUBLANE)
    Bp = n_tiles * TB

    # Lane-pad only to 16 bf16 lanes (not 128 f32): ~32 B/row of input DMA.
    x_p = jnp.zeros((Bp, Fp), jnp.bfloat16).at[:B, :F].set(
        x.astype(jnp.bfloat16))

    in_specs = [pl.BlockSpec((TB, Fp), lambda i: (i, 0))]
    for arr in padded_params:
        # Weights/biases: same block every step -> stay VMEM-resident.
        # (pl.Buffered(1) could drop their redundant second buffer, but the
        #  ~260 KiB saved is noise here, so keep default pipelining.)
        in_specs.append(pl.BlockSpec(arr.shape, lambda i: (0, 0)))

    n_layers = len(padded_params) // 2
    weight_bytes = sum(int(a.size) * a.dtype.itemsize for a in padded_params)
    flops = 2 * Bp * sum(
        padded_params[2 * l].shape[0] * padded_params[2 * l].shape[1]
        for l in range(n_layers))
    bytes_accessed = weight_bytes + int(x_p.size) * 2 + Bp * Op * 2

    out = pl.pallas_call(
        mlp_kernel,
        out_shape=jax.ShapeDtypeStruct((Bp, Op), jnp.bfloat16),
        grid_spec=pltpu.PrefetchScalarGridSpec(
            num_scalar_prefetch=0,
            grid=(n_tiles,),
            in_specs=in_specs,
            out_specs=pl.BlockSpec((TB, Op), lambda i: (i, 0)),
        ),
        compiler_params=pltpu.CompilerParams(
            dimension_semantics=("parallel",),
            vmem_limit_bytes=32 << 20,
        ),
        cost_estimate=pl.CostEstimate(
            flops=flops, transcendentals=0, bytes_accessed=bytes_accessed),
    )(x_p, *padded_params)

    # Outputs are bf16-grade; return f32 to match the PyTorch module's dtype.
    return out[:B, :n_output].astype(jnp.float32)


def init_params(key, n_feature, n_output):
    """torch.nn.Linear-style init (uniform +/- 1/sqrt(fan_in)); W is (in, out)."""
    sizes = [n_feature, 45, 90, 135, 90, 45, n_output]
    params = []
    for i in range(len(sizes) - 1):
        fan_in, fan_out = sizes[i], sizes[i + 1]
        key, kw, kb = jax.random.split(key, 3)
        bound = 1.0 / (fan_in ** 0.5)
        w = jax.random.uniform(kw, (fan_in, fan_out), jnp.float32, -bound, bound)
        b = jax.random.uniform(kb, (fan_out,), jnp.float32, -bound, bound)
        params.append((w, b))
    return params


def reference_forward(x, params):
    """Pure-JAX f32 reference of the PyTorch forward."""
    (w0, b0), (w1, b1), (w2, b2), (w3, b3), (w4, b4), (w5, b5) = params
    h = _leaky_relu(x @ w0 + b0)
    h = _leaky_relu(h @ w1 + b1)
    h = _relu(h @ w2 + b2)
    h = _relu(h @ w3 + b3)
    h = _leaky_relu(h @ w4 + b4)
    return h @ w5 + b5


if __name__ == "__main__":
    n_feature, n_output = 6, 3   # RV (rotation-vector style) input -> force

    params = init_params(jax.random.PRNGKey(0), n_feature, n_output)
    padded = pad_params(params)          # pre-padded once, outside the jit

    # Tiny-batch path (single grid step).
    key = jax.random.PRNGKey(0)
    key, kx = jax.random.split(key)
    x_small = jax.random.normal(kx, (4, n_feature), jnp.float32)
    y_small = jax.block_until_ready(mlp_forward(x_small, padded, n_output))
    y_small_ref = reference_forward(x_small, params)
    assert y_small.shape == (4, n_output)
    assert jnp.allclose(y_small, y_small_ref, atol=5e-2, rtol=5e-2), \
        "small-batch mismatch vs reference"

    # Multi-tile path (exercises batch padding + 2-way grid split).
    key, kx2 = jax.random.split(key)
    x_big = jax.random.normal(kx2, (150, n_feature), jnp.float32)
    y_big = jax.block_until_ready(mlp_forward(x_big, padded, n_output))
    y_big_ref = reference_forward(x_big, params)
    assert y_big.shape == (150, n_output)
    assert jnp.allclose(y_big, y_big_ref, atol=5e-2, rtol=5e-2), \
        "multi-tile mismatch vs reference"

    print("KERNEL_OK")
</pallas_src>

<mosaic_0001>
module attributes {stable_mosaic.version = 11 : i64} {
  func.func @mlp_kernel(%arg0: i32, %arg1: memref<8x16xbf16, #tpu.memory_space<vmem>>, %arg2: memref<16x128xbf16, #tpu.memory_space<vmem>>, %arg3: memref<1x128xf32, #tpu.memory_space<vmem>>, %arg4: memref<128x128xbf16, #tpu.memory_space<vmem>>, %arg5: memref<1x128xf32, #tpu.memory_space<vmem>>, %arg6: memref<128x256xbf16, #tpu.memory_space<vmem>>, %arg7: memref<1x256xf32, #tpu.memory_space<vmem>>, %arg8: memref<256x128xbf16, #tpu.memory_space<vmem>>, %arg9: memref<1x128xf32, #tpu.memory_space<vmem>>, %arg10: memref<128x128xbf16, #tpu.memory_space<vmem>>, %arg11: memref<1x128xf32, #tpu.memory_space<vmem>>, %arg12: memref<128x8xbf16, #tpu.memory_space<vmem>>, %arg13: memref<1x8xf32, #tpu.memory_space<vmem>>, %arg14: memref<8x8xbf16, #tpu.memory_space<vmem>>) attributes {dimension_semantics = [#tpu.dimension_semantics<parallel>], iteration_bounds = array<i64: 1>, scalar_prefetch = 0 : i64, scratch_operands = 0 : i64, tpu.core_type = #tpu.core_type<tc>, window_params = [{transform_indices = @transform_0, window_bounds = array<i64: 8, 16>}, {pipeline_mode = #tpu.pipeline_mode<synchronous>, transform_indices = @transform_1, window_bounds = array<i64: 16, 128>}, {pipeline_mode = #tpu.pipeline_mode<synchronous>, transform_indices = @transform_2, window_bounds = array<i64: 1, 128>}, {pipeline_mode = #tpu.pipeline_mode<synchronous>, transform_indices = @transform_3, window_bounds = array<i64: 128, 128>}, {pipeline_mode = #tpu.pipeline_mode<synchronous>, transform_indices = @transform_4, window_bounds = array<i64: 1, 128>}, {pipeline_mode = #tpu.pipeline_mode<synchronous>, transform_indices = @transform_5, window_bounds = array<i64: 128, 256>}, {pipeline_mode = #tpu.pipeline_mode<synchronous>, transform_indices = @transform_6, window_bounds = array<i64: 1, 256>}, {pipeline_mode = #tpu.pipeline_mode<synchronous>, transform_indices = @transform_7, window_bounds = array<i64: 256, 128>}, {pipeline_mode = #tpu.pipeline_mode<synchronous>, transform_indices = @transform_8, window_bounds = array<i64: 1, 128>}, {pipeline_mode = #tpu.pipeline_mode<synchronous>, transform_indices = @transform_9, window_bounds = array<i64: 128, 128>}, {pipeline_mode = #tpu.pipeline_mode<synchronous>, transform_indices = @transform_10, window_bounds = array<i64: 1, 128>}, {pipeline_mode = #tpu.pipeline_mode<synchronous>, transform_indices = @transform_11, window_bounds = array<i64: 128, 8>}, {pipeline_mode = #tpu.pipeline_mode<synchronous>, transform_indices = @transform_12, window_bounds = array<i64: 1, 8>}, {transform_indices = @transform_13, window_bounds = array<i64: 8, 8>}]} {
    %c0 = arith.constant 0 : index
    %c0_0 = arith.constant 0 : index
    %0 = vector.load %arg1[%c0, %c0_0] : memref<8x16xbf16, #tpu.memory_space<vmem>>, vector<8x16xbf16>
    %c0_1 = arith.constant 0 : index
    %c0_2 = arith.constant 0 : index
    %1 = vector.load %arg2[%c0_1, %c0_2] : memref<16x128xbf16, #tpu.memory_space<vmem>>, vector<16x128xbf16>
    %cst = arith.constant dense<0.000000e+00> : vector<8x128xf32>
    %2 = tpu.matmul %0, %1, %cst {dimension_numbers = #tpu.dot_dimension_numbers<[1], [0], [0], [1], [0, 0, 1, 1], [], []>} : vector<8x16xbf16>, vector<16x128xbf16>, vector<8x128xf32> -> vector<8x128xf32>
    %c0_3 = arith.constant 0 : index
    %c0_4 = arith.constant 0 : index
    %3 = vector.load %arg3[%c0_3, %c0_4] : memref<1x128xf32, #tpu.memory_space<vmem>>, vector<1x128xf32>
    %4 = vector.broadcast %3 : vector<1x128xf32> to vector<8x128xf32>
    %5 = arith.addf %2, %4 : vector<8x128xf32>
    %cst_5 = arith.constant 0.000000e+00 : f32
    %6 = vector.broadcast %cst_5 : f32 to vector<8x128xf32>
    %7 = arith.cmpf oge, %5, %6 : vector<8x128xf32>
    %cst_6 = arith.constant 0.00999999977 : f32
    %8 = vector.broadcast %cst_6 : f32 to vector<8x128xf32>
    %9 = arith.mulf %8, %5 : vector<8x128xf32>
    %10 = arith.select %7, %5, %9 : vector<8x128xi1>, vector<8x128xf32>
    %11 = arith.truncf %10 : vector<8x128xf32> to vector<8x128xbf16>
    %c0_7 = arith.constant 0 : index
    %c0_8 = arith.constant 0 : index
    %12 = vector.load %arg4[%c0_7, %c0_8] : memref<128x128xbf16, #tpu.memory_space<vmem>>, vector<128x128xbf16>
    %cst_9 = arith.constant dense<0.000000e+00> : vector<8x128xf32>
    %13 = tpu.matmul %11, %12, %cst_9 {dimension_numbers = #tpu.dot_dimension_numbers<[1], [0], [0], [1], [0, 0, 1, 1], [], []>} : vector<8x128xbf16>, vector<128x128xbf16>, vector<8x128xf32> -> vector<8x128xf32>
    %c0_10 = arith.constant 0 : index
    %c0_11 = arith.constant 0 : index
    %14 = vector.load %arg5[%c0_10, %c0_11] : memref<1x128xf32, #tpu.memory_space<vmem>>, vector<1x128xf32>
    %15 = vector.broadcast %14 : vector<1x128xf32> to vector<8x128xf32>
    %16 = arith.addf %13, %15 : vector<8x128xf32>
    %cst_12 = arith.constant 0.000000e+00 : f32
    %17 = vector.broadcast %cst_12 : f32 to vector<8x128xf32>
    %18 = arith.cmpf oge, %16, %17 : vector<8x128xf32>
    %cst_13 = arith.constant 0.00999999977 : f32
    %19 = vector.broadcast %cst_13 : f32 to vector<8x128xf32>
    %20 = arith.mulf %19, %16 : vector<8x128xf32>
    %21 = arith.select %18, %16, %20 : vector<8x128xi1>, vector<8x128xf32>
    %22 = arith.truncf %21 : vector<8x128xf32> to vector<8x128xbf16>
    %c0_14 = arith.constant 0 : index
    %c0_15 = arith.constant 0 : index
    %23 = vector.load %arg6[%c0_14, %c0_15] : memref<128x256xbf16, #tpu.memory_space<vmem>>, vector<128x256xbf16>
    %cst_16 = arith.constant dense<0.000000e+00> : vector<8x256xf32>
    %24 = tpu.matmul %22, %23, %cst_16 {dimension_numbers = #tpu.dot_dimension_numbers<[1], [0], [0], [1], [0, 0, 1, 1], [], []>} : vector<8x128xbf16>, vector<128x256xbf16>, vector<8x256xf32> -> vector<8x256xf32>
    %c0_17 = arith.constant 0 : index
    %c0_18 = arith.constant 0 : index
    %25 = vector.load %arg7[%c0_17, %c0_18] : memref<1x256xf32, #tpu.memory_space<vmem>>, vector<1x256xf32>
    %26 = vector.broadcast %25 : vector<1x256xf32> to vector<8x256xf32>
    %27 = arith.addf %24, %26 : vector<8x256xf32>
    %cst_19 = arith.constant 0.000000e+00 : f32
    %28 = vector.broadcast %cst_19 : f32 to vector<8x256xf32>
    %29 = arith.maximumf %27, %28 : vector<8x256xf32>
    %30 = arith.truncf %29 : vector<8x256xf32> to vector<8x256xbf16>
    %c0_20 = arith.constant 0 : index
    %c0_21 = arith.constant 0 : index
    %31 = vector.load %arg8[%c0_20, %c0_21] : memref<256x128xbf16, #tpu.memory_space<vmem>>, vector<256x128xbf16>
    %cst_22 = arith.constant dense<0.000000e+00> : vector<8x128xf32>
    %32 = tpu.matmul %30, %31, %cst_22 {dimension_numbers = #tpu.dot_dimension_numbers<[1], [0], [0], [1], [0, 0, 1, 1], [], []>} : vector<8x256xbf16>, vector<256x128xbf16>, vector<8x128xf32> -> vector<8x128xf32>
    %c0_23 = arith.constant 0 : index
    %c0_24 = arith.constant 0 : index
    %33 = vector.load %arg9[%c0_23, %c0_24] : memref<1x128xf32, #tpu.memory_space<vmem>>, vector<1x128xf32>
    %34 = vector.broadcast %33 : vector<1x128xf32> to vector<8x128xf32>
    %35 = arith.addf %32, %34 : vector<8x128xf32>
    %cst_25 = arith.constant 0.000000e+00 : f32
    %36 = vector.broadcast %cst_25 : f32 to vector<8x128xf32>
    %37 = arith.maximumf %35, %36 : vector<8x128xf32>
    %38 = arith.truncf %37 : vector<8x128xf32> to vector<8x128xbf16>
    %c0_26 = arith.constant 0 : index
    %c0_27 = arith.constant 0 : index
    %39 = vector.load %arg10[%c0_26, %c0_27] : memref<128x128xbf16, #tpu.memory_space<vmem>>, vector<128x128xbf16>
    %cst_28 = arith.constant dense<0.000000e+00> : vector<8x128xf32>
    %40 = tpu.matmul %38, %39, %cst_28 {dimension_numbers = #tpu.dot_dimension_numbers<[1], [0], [0], [1], [0, 0, 1, 1], [], []>} : vector<8x128xbf16>, vector<128x128xbf16>, vector<8x128xf32> -> vector<8x128xf32>
    %c0_29 = arith.constant 0 : index
    %c0_30 = arith.constant 0 : index
    %41 = vector.load %arg11[%c0_29, %c0_30] : memref<1x128xf32, #tpu.memory_space<vmem>>, vector<1x128xf32>
    %42 = vector.broadcast %41 : vector<1x128xf32> to vector<8x128xf32>
    %43 = arith.addf %40, %42 : vector<8x128xf32>
    %cst_31 = arith.constant 0.000000e+00 : f32
    %44 = vector.broadcast %cst_31 : f32 to vector<8x128xf32>
    %45 = arith.cmpf oge, %43, %44 : vector<8x128xf32>
    %cst_32 = arith.constant 0.00999999977 : f32
    %46 = vector.broadcast %cst_32 : f32 to vector<8x128xf32>
    %47 = arith.mulf %46, %43 : vector<8x128xf32>
    %48 = arith.select %45, %43, %47 : vector<8x128xi1>, vector<8x128xf32>
    %49 = arith.truncf %48 : vector<8x128xf32> to vector<8x128xbf16>
    %c0_33 = arith.constant 0 : index
    %c0_34 = arith.constant 0 : index
    %50 = vector.load %arg12[%c0_33, %c0_34] : memref<128x8xbf16, #tpu.memory_space<vmem>>, vector<128x8xbf16>
    %cst_35 = arith.constant dense<0.000000e+00> : vector<8x8xf32>
    %51 = tpu.matmul %49, %50, %cst_35 {dimension_numbers = #tpu.dot_dimension_numbers<[1], [0], [0], [1], [0, 0, 1, 1], [], []>} : vector<8x128xbf16>, vector<128x8xbf16>, vector<8x8xf32> -> vector<8x8xf32>
    %c0_36 = arith.constant 0 : index
    %c0_37 = arith.constant 0 : index
    %52 = vector.load %arg13[%c0_36, %c0_37] : memref<1x8xf32, #tpu.memory_space<vmem>>, vector<1x8xf32>
    %53 = vector.broadcast %52 : vector<1x8xf32> to vector<8x8xf32>
    %54 = arith.addf %51, %53 : vector<8x8xf32>
    %55 = arith.truncf %54 : vector<8x8xf32> to vector<8x8xbf16>
    %c0_38 = arith.constant 0 : index
    %c0_39 = arith.constant 0 : index
    %56 = vector.load %arg14[%c0_38, %c0_39] : memref<8x8xbf16, #tpu.memory_space<vmem>>, vector<8x8xbf16>
    tpu.vector_store %arg14[%c0_38, %c0_39], %55 {strides = array<i32>} : memref<8x8xbf16, #tpu.memory_space<vmem>>, vector<8x8xbf16>,
    return
  }
  func.func @transform_0(%arg0: i32) -> (i32, i32) {
    %c0_i32 = arith.constant 0 : i32
    %c0_i32_0 = arith.constant 0 : i32
    return %arg0, %c0_i32 : i32, i32
  }
  func.func @transform_1(%arg0: i32) -> (i32, i32) {
    %c0_i32 = arith.constant 0 : i32
    %c0_i32_0 = arith.constant 0 : i32
    %c0_i32_1 = arith.constant 0 : i32
    return %c0_i32, %c0_i32_0 : i32, i32
  }
  func.func @transform_2(%arg0: i32) -> (i32, i32) {
    %c0_i32 = arith.constant 0 : i32
    %c0_i32_0 = arith.constant 0 : i32
    %c0_i32_1 = arith.constant 0 : i32
    return %c0_i32, %c0_i32_0 : i32, i32
  }
  func.func @transform_3(%arg0: i32) -> (i32, i32) {
    %c0_i32 = arith.constant 0 : i32
    %c0_i32_0 = arith.constant 0 : i32
    %c0_i32_1 = arith.constant 0 : i32
    return %c0_i32, %c0_i32_0 : i32, i32
  }
  func.func @transform_4(%arg0: i32) -> (i32, i32) {
    %c0_i32 = arith.constant 0 : i32
    %c0_i32_0 = arith.constant 0 : i32
    %c0_i32_1 = arith.constant 0 : i32
    return %c0_i32, %c0_i32_0 : i32, i32
  }
  func.func @transform_5(%arg0: i32) -> (i32, i32) {
    %c0_i32 = arith.constant 0 : i32
    %c0_i32_0 = arith.constant 0 : i32
    %c0_i32_1 = arith.constant 0 : i32
    return %c0_i32, %c0_i32_0 : i32, i32
  }
  func.func @transform_6(%arg0: i32) -> (i32, i32) {
    %c0_i32 = arith.constant 0 : i32
    %c0_i32_0 = arith.constant 0 : i32
    %c0_i32_1 = arith.constant 0 : i32
    return %c0_i32, %c0_i32_0 : i32, i32
  }
  func.func @transform_7(%arg0: i32) -> (i32, i32) {
    %c0_i32 = arith.constant 0 : i32
    %c0_i32_0 = arith.constant 0 : i32
    %c0_i32_1 = arith.constant 0 : i32
    return %c0_i32, %c0_i32_0 : i32, i32
  }
  func.func @transform_8(%arg0: i32) -> (i32, i32) {
    %c0_i32 = arith.constant 0 : i32
    %c0_i32_0 = arith.constant 0 : i32
    %c0_i32_1 = arith.constant 0 : i32
    return %c0_i32, %c0_i32_0 : i32, i32
  }
  func.func @transform_9(%arg0: i32) -> (i32, i32) {
    %c0_i32 = arith.constant 0 : i32
    %c0_i32_0 = arith.constant 0 : i32
    %c0_i32_1 = arith.constant 0 : i32
    return %c0_i32, %c0_i32_0 : i32, i32
  }
  func.func @transform_10(%arg0: i32) -> (i32, i32) {
    %c0_i32 = arith.constant 0 : i32
    %c0_i32_0 = arith.constant 0 : i32
    %c0_i32_1 = arith.constant 0 : i32
    return %c0_i32, %c0_i32_0 : i32, i32
  }
  func.func @transform_11(%arg0: i32) -> (i32, i32) {
    %c0_i32 = arith.constant 0 : i32
    %c0_i32_0 = arith.constant 0 : i32
    %c0_i32_1 = arith.constant 0 : i32
    return %c0_i32, %c0_i32_0 : i32, i32
  }
  func.func @transform_12(%arg0: i32) -> (i32, i32) {
    %c0_i32 = arith.constant 0 : i32
    %c0_i32_0 = arith.constant 0 : i32
    %c0_i32_1 = arith.constant 0 : i32
    return %c0_i32, %c0_i32_0 : i32, i32
  }
  func.func @transform_13(%arg0: i32) -> (i32, i32) {
    %c0_i32 = arith.constant 0 : i32
    %c0_i32_0 = arith.constant 0 : i32
    return %arg0, %c0_i32 : i32, i32
  }
}

</mosaic_0001>

<bundles_post_ra>
// kernel: mlp_forward.1
= control target key start
LH: loop header
LB: loop body
LE: loop exit
PB: predicated region body
PF: predicated region fallthrough
CT: control target
= control target key end

     0   :  { %18 = vsyncpa [#allocation3], 0  ;;  %s1346_s0 = inlined_call_operand.vmem [shape: bf16[8,16], index: 0, kind: input, shape index: {}]   ;;  %s1347_s1 = inlined_call_operand.vmem [shape: bf16[16,128], index: 1, kind: input, shape index: {}]   ;;  %s1348_s2 = inlined_call_operand.vmem [shape: f32[1,128], index: 2, kind: input, shape index: {}]   ;;  %s1349_s3 = inlined_call_operand.vmem [shape: bf16[128,128], index: 3, kind: input, shape index: {}]   ;;  %s1350_s4 = inlined_call_operand.vmem [shape: f32[1,128], index: 4, kind: input, shape index: {}]   ;;  %s1351_s5 = inlined_call_operand.hbm [shape: bf16[128,256], index: 5, kind: input, shape index: {}]   ;;  %s1352_s6 = inlined_call_operand.vmem [shape: f32[1,256], index: 6, kind: input, shape index: {}]   ;;  %s1353_s7 = inlined_call_operand.hbm [shape: bf16[256,128], index: 7, kind: input, shape index: {}]   ;;  %s1354_s8 = inlined_call_operand.vmem [shape: f32[1,128], index: 8, kind: input, shape index: {}]   ;;  %s1355_s9 = inlined_call_operand.hbm [shape: bf16[128,128], index: 9, kind: input, shape index: {}]   ;;  %s1356_s10 = inlined_call_operand.vmem [shape: f32[1,128], index: 10, kind: input, shape index: {}]   ;;  %s1357_s11 = inlined_call_operand.vmem [shape: bf16[128,8], index: 11, kind: input, shape index: {}]   ;;  %s1358_s12 = inlined_call_operand.vmem [shape: f32[1,8], index: 12, kind: input, shape index: {}]   ;;  %s1359_s13 = inlined_call_operand.vmem [shape: bf16[8,8], index: 13, kind: output, shape index: {}]  }
   0x1   :  { %19 = vsyncpa [#allocation5], 0  ;;  %s1149_s25 = smov [#allocation4]  }
   0x2   :  { %s49_s26 = sshll.u32 %s1149_s25, 4  ;;  %s50_s26 = int_to_ptr.vmem [resolvable:$true] %s49_s26 }
   0x3   :  { %s1093_s27 = scalar_lea.vmem %s50_s26, 2048  ;;  %p1098_p1 = scmp.lt.s32.totalorder %s50_s26, %s50_s26 }
   0x4   :  { %p1094_p0 = scmp.ne.s32.totalorder %s50_s26, %s1093_s27  ;;  %p1099_p2 = scmp.lt.s32.totalorder %s1093_s27, %s1093_s27 }
   0x6   :  { %p1100_p3 = por %p1099_p2, %p1098_p1 }
   0x8   :  { %p1101_p4 = pnand %p1100_p3, %p1094_p0 }
   0xa   :  { %1104 = shalt.err (!%p1101_p4)
}
   0xb   :  { %s1150_s28 = smov 64   ;;  %s1151_s29 = smov 4  }
   0xc   :  { %55 = dma.hbm_to_vmem [thread:$0]  %s1353_s7, 2048, %s50_s26, [#allocation5], %s1150_s28, %s1150_s28, %s1151_s29  }
   0xd   :  { %s1152_s15 = smov [#allocation2]  }
   0xe   :  { %s35_s16 = sshll.u32 %s1152_s15, 4  ;;  %s36_s16 = int_to_ptr.vmem [resolvable:$true] %s35_s16 }
   0xf   :  { %s1113_s17 = scalar_lea.vmem %s36_s16, 2048  ;;  %p1118_p6 = scmp.lt.s32.totalorder %s36_s16, %s36_s16 }
  0x10   :  { %p1114_p5 = scmp.ne.s32.totalorder %s36_s16, %s1113_s17  ;;  %p1119_p7 = scmp.lt.s32.totalorder %s1113_s17, %s1113_s17 }
  0x12   :  { %p1120_p8 = por %p1119_p7, %p1118_p6 }
  0x14   :  { %p1121_p9 = pnand %p1120_p8, %p1114_p5 }
  0x16   :  { %1124 = shalt.err (!%p1121_p9)
}
  0x17   :  { %s1153_s18 = smov 128   ;;  %s1154_s19 = smov 8  }
  0x18   :  { %41 = dma.hbm_to_vmem [thread:$0]  %s1351_s5, 2048, %s36_s16, [#allocation3], %s1153_s18, %s1153_s18, %s1154_s19  }
  0x19   :  { %s1155_s22 = smov [#allocation6]  }
  0x1a   :  { %s63_s23 = sshll.u32 %s1155_s22, 4  ;;  %s64_s23 = int_to_ptr.vmem [resolvable:$true] %s63_s23 }
  0x1b   :  { %s1133_s7 = scalar_lea.vmem %s64_s23, 1024  ;;  %p1138_p11 = scmp.lt.s32.totalorder %s64_s23, %s64_s23 }
  0x1c   :  { %p1134_p10 = scmp.ne.s32.totalorder %s64_s23, %s1133_s7  ;;  %p1139_p12 = scmp.lt.s32.totalorder %s1133_s7, %s1133_s7 }
  0x1e   :  { %p1140_p13 = por %p1139_p12, %p1138_p11 }
  0x20   :  { %p1141_p0 = pnand %p1140_p13, %p1134_p10 }
  0x22   :  { %1144 = shalt.err (!%p1141_p0)
}
  0x23   :  { %69 = dma.hbm_to_vmem [thread:$0]  %s1355_s9, 1024, %s64_s23, [#allocation5], %s1150_s28, %s1150_s28, %s1151_s29  }
  0x24   :  { %1145 = dma.done.wait [#allocation3], 2048  }
  0x25   :  { %1146 = vsyncadd [#allocation3], 4294965248 }
  0x26   :  { %1147 = dma.done.wait [#allocation5], 3072  }
  0x27   :  { %1148 = vsyncadd [#allocation5], 4294964224  ;;  %v1156_v0 = vmov 0.0   ;;  %vm1157_vm0 = vmmov 0   ;;  %v1020_v1 = vld [vmem:[%s1347_s1] sm:$0xff]   ;;  %vm102_vm1 = vcmask 130048  }
  0x28   :  { %944 = vmatprep.subr.bf16.mxu0 %v1156_v0  ;;  %946 = vmatprep.mubr.msk.bf16.mxu0 %vm1157_vm0, %v1156_v0  ;;  %v86_v2 = vld [vmem:[%s1346_s0] sm:$0xf]  ;;  %v1021_v3 = vld [vmem:[%s1349_s3 + $0x38] sm:$0xff]   ;;  %v1022_v4 = vld [vmem:[%s1349_s3 + $0x30] sm:$0xff]   ;;  %v1158_v36 = vmov 0   ;;  %vm822_vm5 = vcmask 60416  }
  0x29   :  { %950 = vmatprep.subr.bf16.mxu1 %v1156_v0  ;;  %966 = vmatprep.mubr.msk.bf16.mxu1 %vm1157_vm0, %v1156_v0  ;;  %v1023_v5 = vld [vmem:[%s1349_s3 + $0x28] sm:$0xff]   ;;  %v1024_v6 = vld [vmem:[%s1349_s3 + $0x20] sm:$0xff]   ;;  %v1025_v7 = vld [vmem:[%s1349_s3 + $0x18] sm:$0xff]  }
  0x2a   :  { %945 = vmatpush3.bf16.msra.mxu0 %v1020_v1  ;;  %951 = vmatpush3.bf16.msra.mxu1 %v1021_v3  ;;  %v1026_v8 = vld [vmem:[%s1349_s3 + $0x10] sm:$0xff]   ;;  %v1027_v9 = vld [vmem:[%s1349_s3 + $0x8] sm:$0xff]   ;;  %v1028_v10 = vld [vmem:[%s1349_s3] sm:$0xff]  }
  0x2b   :  { %952 = vmatprep.subr.bf16.mxu1 %v1156_v0  ;;  %v1029_v11 = vld [vmem:[#allocation2 + $0x70] ss:$8 sps:$4 sm:$0xff]   ;;  %v1031_v12 = vld [vmem:[#allocation2 + $0x74] ss:$8 sps:$4 sm:$0xff]   ;;  %v1034_v13 = vld [vmem:[#allocation2 + $0x64] ss:$8 sps:$4 sm:$0xff]  }
  0x2c   :  { %373 = vmatprep.subr.bf16.mxu0 %v1031_v12  ;;  %v1032_v14 = vld [vmem:[#allocation2 + $0x60] ss:$8 sps:$4 sm:$0xff]   ;;  %v1037_v15 = vld [vmem:[#allocation2 + $0x54] ss:$8 sps:$4 sm:$0xff]   ;;  %v1035_v16 = vld [vmem:[#allocation2 + $0x50] ss:$8 sps:$4 sm:$0xff]  }
  0x2d   :  { %947 = vmatmul.mubr.msk.bf16.vlgmr.msra.gmra.mxu0 %vm102_vm1, %v86_v2  ;;  %v1040_v17 = vld [vmem:[#allocation2 + $0x44] ss:$8 sps:$4 sm:$0xff]   ;;  %v1038_v18 = vld [vmem:[#allocation2 + $0x40] ss:$8 sps:$4 sm:$0xff]   ;;  %v1043_v19 = vld [vmem:[#allocation2 + $0x34] ss:$8 sps:$4 sm:$0xff]  }
  0x2e   :  { %953 = vmatpush3.bf16.msra.mxu1 %v1022_v4  ;;  %374 = vmatpush1.bf16.msra.mxu0 %v1029_v11  ;;  %v1041_v20 = vld [vmem:[#allocation2 + $0x30] ss:$8 sps:$4 sm:$0xff]   ;;  %v1046_v21 = vld [vmem:[#allocation2 + $0x24] ss:$8 sps:$4 sm:$0xff]   ;;  %v1044_v22 = vld [vmem:[#allocation2 + $0x20] ss:$8 sps:$4 sm:$0xff]   ;;  %v283_v4 = vlaneseq }
  0x2f   :  { %954 = vmatprep.subr.bf16.mxu1 %v1156_v0  ;;  %375 = vmatprep.subr.bf16.mxu0 %v1034_v13  ;;  %v830_v23 = vld [vmem:[%s1348_s2] ss:$0 sm:$0xff]  ;;  %v1049_v32 = vld [vmem:[#allocation2 + $0x14] ss:$8 sps:$4 sm:$0xff]   ;;  %v1047_v33 = vld [vmem:[#allocation2 + $0x10] ss:$8 sps:$4 sm:$0xff]  }
  0x30   :  { %v1052_v34 = vld [vmem:[#allocation2 + $0x4] ss:$8 sps:$4 sm:$0xff]   ;;  %v1050_v35 = vld [vmem:[#allocation2] ss:$8 sps:$4 sm:$0xff]   ;;  %405 = vmatprep.mubr.bf16.mxu0 %v1158_v36  ;;  %v1053_v37 = vld [vmem:[#allocation4 + $0x78] sm:$0xff]  }
  0x31   :  { %v1054_v38 = vld [vmem:[#allocation4 + $0x38] sm:$0xff]   ;;  %v1055_v39 = vld [vmem:[#allocation4 + $0x70] sm:$0xff]   ;;  %v1057_v41 = vld [vmem:[#allocation4 + $0x68] sm:$0xff]  }
  0x32   :  { %955 = vmatpush3.bf16.msra.mxu1 %v1023_v5  ;;  %376 = vmatpush1.bf16.msra.mxu0 %v1032_v14  ;;  %v1056_v40 = vld [vmem:[#allocation4 + $0x30] sm:$0xff]   ;;  %v1058_v42 = vld [vmem:[#allocation4 + $0x28] sm:$0xff]   ;;  %v1059_v43 = vld [vmem:[#allocation4 + $0x60] sm:$0xff]   ;;  %v284_v5 = vshrl.u32 %v283_v4, 7 }
  0x33   :  { %956 = vmatprep.subr.bf16.mxu1 %v1156_v0  ;;  %377 = vmatprep.subr.bf16.mxu0 %v1037_v15  ;;  %v1060_v44 = vld [vmem:[#allocation4 + $0x20] sm:$0xff]   ;;  %v1061_v45 = vld [vmem:[#allocation4 + $0x58] sm:$0xff]   ;;  %v1063_v47 = vld [vmem:[#allocation4 + $0x50] sm:$0xff]  }
  0x34   :  { %v1062_v46 = vld [vmem:[#allocation4 + $0x18] sm:$0xff]   ;;  %v1064_v48 = vld [vmem:[#allocation4 + $0x10] sm:$0xff]   ;;  %v833_v49 = vld [vmem:[%s1350_s4] ss:$0 sm:$0xff] }
  0x35   :  { %v1065_v58 = vld [vmem:[#allocation4 + $0x48] sm:$0xff]   ;;  %v1067_v60 = vld [vmem:[#allocation4 + $0x40] sm:$0xff]   ;;  %v1069_v62 = vld [vmem:[#allocation6 + $0x38] sm:$0xff]  }
  0x36   :  { %957 = vmatpush3.bf16.msra.mxu1 %v1024_v6  ;;  %378 = vmatpush1.bf16.msra.mxu0 %v1035_v16  ;;  %v1066_v59 = vld [vmem:[#allocation4 + $0x8] sm:$0xff]   ;;  %v1068_v61 = vld [vmem:[#allocation4] sm:$0xff]   ;;  %v1070_v63 = vld [vmem:[#allocation6 + $0x30] sm:$0xff]   ;;  %v285_v6 = vsub.s32 0, %v284_v5 }
  0x37   :  { %958 = vmatprep.subr.bf16.mxu1 %v1156_v0  ;;  %379 = vmatprep.subr.bf16.mxu0 %v1040_v17  ;;  %v1071_v1 = vld [vmem:[#allocation6 + $0x28] sm:$0xff]   ;;  %v1072_v2 = vld [vmem:[#allocation6 + $0x20] sm:$0xff]   ;;  %v1073_v3 = vld [vmem:[#allocation6 + $0x18] sm:$0xff]  }
  0x3a   :  { %959 = vmatpush3.bf16.msra.mxu1 %v1025_v7  ;;  %380 = vmatpush1.bf16.msra.mxu0 %v1038_v18  ;;  %v281_v7 = vld [vmem:[%s1352_s6] sm:$0x3] }
  0x3b   :  { %960 = vmatprep.subr.bf16.mxu1 %v1156_v0  ;;  %381 = vmatprep.subr.bf16.mxu0 %v1043_v19 }
  0x3e   :  { %961 = vmatpush3.bf16.msra.mxu1 %v1026_v8  ;;  %382 = vmatpush1.bf16.msra.mxu0 %v1041_v20  ;;  %v289_v8 = vsub.s32 1, %v284_v5 }
  0x3f   :  { %962 = vmatprep.subr.bf16.mxu1 %v1156_v0  ;;  %383 = vmatprep.subr.bf16.mxu0 %v1046_v21  ;;  %v1074_v21 = vld [vmem:[#allocation6 + $0x10] sm:$0xff]  }
  0x42   :  { %963 = vmatpush3.bf16.msra.mxu1 %v1027_v9  ;;  %384 = vmatpush1.bf16.msra.mxu0 %v1044_v22  ;;  %v286_v9 = vrot.slane %v281_v7, %v285_v6  ;;  %v1075_v22 = vld [vmem:[#allocation6 + $0x8] sm:$0xff]  }
  0x43   :  { %964 = vmatprep.subr.bf16.mxu1 %v1156_v0  ;;  %385 = vmatprep.subr.bf16.mxu0 %v1049_v32 }
  0x46   :  { %965 = vmatpush3.bf16.msra.mxu1 %v1028_v10  ;;  %386 = vmatpush1.bf16.msra.mxu0 %v1047_v33  ;;  %v290_v10 = vrot.slane %v281_v7, %v289_v8 }
  0x47   :  { %387 = vmatprep.subr.bf16.mxu0 %v1052_v34  ;;  %904 = vmatprep.subr.bf16.mxu1 %v1053_v37 }
  0x4a   :  { %388 = vmatpush1.bf16.msra.mxu0 %v1050_v35 }
  0x4b   :  { %970 = vmatprep.subr.bf16.mxu0 %v1156_v0 }
  0xed   :  { %v140_v24 = vpop.f32.mrf.mxu0 }
  0xee   :  { %v141_v25 = vadd.f32 %v830_v23, %v140_v24  ;;  %v1076_v23 = vld [vmem:[#allocation6] sm:$0xff]   ;;  %v1077_v24 = vld [vmem:[%s1357_s11 + $0x38] sm:$0xff]  }
  0xef   :  { %v948_v26 = vpop.f32.mrf.mxu0 }
  0xf0   :  { %vm146_vm2 = vcmp.ge.f32.partialorder %v141_v25, 0.0  ;;  %v147_v27 = vmul.f32 0.01, %v141_v25  ;;  %v1079_v26 = vld [vmem:[%s1357_s11 + $0x28] sm:$0xff]  }
  0xf1   :  { %v143_v28 = vpop.f32.mrf.mxu0 }
  0xf2   :  { %v148_v29 = vsel %vm146_vm2, %v141_v25, %v147_v27  ;;  %v1078_v25 = vld [vmem:[%s1357_s11 + $0x30] sm:$0xff]   ;;  %v1080_v27 = vld [vmem:[%s1357_s11 + $0x20] sm:$0xff]   ;;  %v1081_v28 = vld [vmem:[%s1357_s11 + $0x18] sm:$0xff]  }
  0xf3   :  { %v949_v30 = vpop.f32.mrf.mxu0  ;;  %v149_v31 = vpack.c.bf16 %v148_v29, %v148_v29  ;;  %v1082_v29 = vld [vmem:[%s1357_s11 + $0x10] sm:$0xff]  }
  0xf5   :  { %967 = vmatmul.mubr.bf16.vlgmr.msra.gmra.mxu1 %v149_v31  ;;  %v858_v31 = vld [vmem:[%s1354_s8] ss:$0 sm:$0xff] }
  0xf6   :  { %905 = vmatpush3.bf16.msra.mxu1 %v1054_v38 }
  0xf7   :  { %906 = vmatprep.subr.bf16.mxu1 %v1055_v39  ;;  %v1083_v39 = vld [vmem:[%s1357_s11 + $0x8] sm:$0xff]  }
  0xfa   :  { %907 = vmatpush3.bf16.msra.mxu1 %v1056_v40  ;;  %v1084_v40 = vld [vmem:[%s1357_s11] sm:$0xff]  }
  0xfb   :  { %908 = vmatprep.subr.bf16.mxu1 %v1057_v41  ;;  %v875_v41 = vld [vmem:[%s1356_s10] ss:$0 sm:$0xff] }
  0xfe   :  { %909 = vmatpush3.bf16.msra.mxu1 %v1058_v42 }
  0xff   :  { %910 = vmatprep.subr.bf16.mxu1 %v1059_v43 }
 0x102   :  { %911 = vmatpush3.bf16.msra.mxu1 %v1060_v44 }
 0x103   :  { %912 = vmatprep.subr.bf16.mxu1 %v1061_v45 }
 0x106   :  { %913 = vmatpush3.bf16.msra.mxu1 %v1062_v46 }
 0x107   :  { %914 = vmatprep.subr.bf16.mxu1 %v1063_v47 }
 0x10a   :  { %915 = vmatpush3.bf16.msra.mxu1 %v1064_v48 }
 0x10b   :  { %916 = vmatprep.subr.bf16.mxu1 %v1065_v58 }
 0x10e   :  { %917 = vmatpush3.bf16.msra.mxu1 %v1066_v59 }
 0x10f   :  { %918 = vmatprep.subr.bf16.mxu1 %v1067_v60 }
 0x112   :  { %919 = vmatpush3.bf16.msra.mxu1 %v1068_v61 }
 0x113   :  { %990 = vmatprep.subr.bf16.mxu1 %v1156_v0 }
 0x1b5   :  { %v255_v50 = vpop.f32.mrf.mxu1 }
 0x1b6   :  { %v256_v51 = vadd.f32 %v833_v49, %v255_v50 }
 0x1b7   :  { %v968_v52 = vpop.f32.mrf.mxu1 }
 0x1b8   :  { %vm261_vm3 = vcmp.ge.f32.partialorder %v256_v51, 0.0  ;;  %v262_v53 = vmul.f32 0.01, %v256_v51 }
 0x1b9   :  { %v258_v54 = vpop.f32.mrf.mxu1 }
 0x1ba   :  { %v263_v55 = vsel %vm261_vm3, %v256_v51, %v262_v53 }
 0x1bb   :  { %v264_v56 = vpack.c.bf16 %v263_v55, %v263_v55  ;;  %v969_v57 = vpop.f32.mrf.mxu1 }
 0x1bd   :  { %406 = vmatmul.mubr.bf16.vlgmr.msra.gmra.mxu0 %v264_v56 }
 0x1be   :  { %986 = vmatprep.mubr.msk.bf16.mxu0 %vm1157_vm0, %v1156_v0  ;;  %971 = vmatpush3.bf16.msra.mxu0 %v1069_v62 }
 0x1bf   :  { %972 = vmatprep.subr.bf16.mxu0 %v1156_v0 }
 0x1c2   :  { %973 = vmatpush3.bf16.msra.mxu0 %v1070_v63 }
 0x1c3   :  { %974 = vmatprep.subr.bf16.mxu0 %v1156_v0 }
 0x1c6   :  { %975 = vmatpush3.bf16.msra.mxu0 %v1071_v1 }
 0x1c7   :  { %976 = vmatprep.subr.bf16.mxu0 %v1156_v0 }
 0x1ca   :  { %977 = vmatpush3.bf16.msra.mxu0 %v1072_v2 }
 0x1cb   :  { %978 = vmatprep.subr.bf16.mxu0 %v1156_v0 }
 0x1ce   :  { %979 = vmatpush3.bf16.msra.mxu0 %v1073_v3 }
 0x1cf   :  { %980 = vmatprep.subr.bf16.mxu0 %v1156_v0 }
 0x1d2   :  { %981 = vmatpush3.bf16.msra.mxu0 %v1074_v21 }
 0x1d3   :  { %982 = vmatprep.subr.bf16.mxu0 %v1156_v0 }
 0x1d6   :  { %983 = vmatpush3.bf16.msra.mxu0 %v1075_v22 }
 0x1d7   :  { %984 = vmatprep.subr.bf16.mxu0 %v1156_v0 }
 0x1da   :  { %985 = vmatpush3.bf16.msra.mxu0 %v1076_v23 }
 0x27d   :  { %v407_v11 = vpop.f32.mrf.mxu0 }
 0x27e   :  { %v408_v12 = vadd.f32 %v407_v11, %v286_v9 }
 0x27f   :  { %v409_v13 = vpop.f32.mrf.mxu0 }
 0x280   :  { %v410_v14 = vadd.f32 %v409_v13, %v290_v10  ;;  %v414_v15 = vmax.f32 %v408_v12, 0.0 }
 0x281   :  { %v411_v16 = vpop.f32.mrf.mxu0 }
 0x282   :  { %v415_v17 = vmax.f32 %v410_v14, 0.0  ;;  %v416_v20 = vpack.c.bf16 %v414_v15, %v414_v15 }
 0x283   :  { %v412_v18 = vpop.f32.mrf.mxu0 }
 0x284   :  { %v417_v19 = vpack.c.bf16 %v415_v17, %v415_v17 }
 0x286   :  { %585 = vmatprep.mubr.bf16.mxu1 %v417_v19 }
 0x287   :  { %586 = vmatmul.mubr.bf16.vlgmr.msra.gmra.mxu1 %v416_v20 }
 0x288   :  { %1006 = vmatprep.mubr.msk.bf16.mxu1 %vm1157_vm0, %v1156_v0  ;;  %991 = vmatpush3.bf16.msra.mxu1 %v1077_v24 }
 0x289   :  { %992 = vmatprep.subr.bf16.mxu1 %v1156_v0 }
 0x28c   :  { %993 = vmatpush3.bf16.msra.mxu1 %v1078_v25 }
 0x28d   :  { %994 = vmatprep.subr.bf16.mxu1 %v1156_v0 }
 0x290   :  { %995 = vmatpush3.bf16.msra.mxu1 %v1079_v26 }
 0x291   :  { %996 = vmatprep.subr.bf16.mxu1 %v1156_v0 }
 0x294   :  { %997 = vmatpush3.bf16.msra.mxu1 %v1080_v27 }
 0x295   :  { %998 = vmatprep.subr.bf16.mxu1 %v1156_v0 }
 0x298   :  { %999 = vmatpush3.bf16.msra.mxu1 %v1081_v28 }
 0x299   :  { %1000 = vmatprep.subr.bf16.mxu1 %v1156_v0 }
 0x29c   :  { %1001 = vmatpush3.bf16.msra.mxu1 %v1082_v29 }
 0x29d   :  { %1002 = vmatprep.subr.bf16.mxu1 %v1156_v0 }
 0x2a0   :  { %1003 = vmatpush3.bf16.msra.mxu1 %v1083_v39 }
 0x2a1   :  { %1004 = vmatprep.subr.bf16.mxu1 %v1156_v0  ;;  %v884_v0 = vld [vmem:[%s1358_s12] ss:$0 sm:$0xff] }
 0x2a4   :  { %1005 = vmatpush3.bf16.msra.mxu1 %v1084_v40 }
 0x347   :  { %v920_v30 = vpop.f32.mrf.mxu1 }
 0x349   :  { %v921_v32 = vpop.f32.mrf.mxu1 }
 0x34a   :  { %v922_v33 = vadd.f32 %v921_v32, %v920_v30 }
 0x34b   :  { %v923_v34 = vpop.f32.mrf.mxu1 }
 0x34c   :  { %v588_v35 = vadd.f32 %v922_v33, %v858_v31 }
 0x34d   :  { %v924_v36 = vpop.f32.mrf.mxu1 }
 0x34e   :  { %v593_v37 = vmax.f32 %v588_v35, 0.0 }
 0x350   :  { %v594_v38 = vpack.c.bf16 %v593_v37, %v593_v37 }
 0x352   :  { %987 = vmatmul.mubr.bf16.vlgmr.msra.gmra.mxu0 %v594_v38 }
 0x412   :  { %v700_v42 = vpop.f32.mrf.mxu0 }
 0x413   :  { %v701_v43 = vadd.f32 %v875_v41, %v700_v42 }
 0x414   :  { %v988_v44 = vpop.f32.mrf.mxu0 }
 0x415   :  { %vm706_vm4 = vcmp.ge.f32.partialorder %v701_v43, 0.0  ;;  %v707_v45 = vmul.f32 0.01, %v701_v43 }
 0x416   :  { %v703_v46 = vpop.f32.mrf.mxu0 }
 0x417   :  { %v708_v47 = vsel %vm706_vm4, %v701_v43, %v707_v45 }
 0x418   :  { %v709_v48 = vpack.c.bf16 %v708_v47, %v708_v47  ;;  %v989_v49 = vpop.f32.mrf.mxu0 }
 0x41a   :  { %1007 = vmatmul.mubr.bf16.vlgmr.msra.gmra.mxu1 %v709_v48 }
 0x4da   :  { %v815_v50 = vpop.f32.mrf.mxu1 }
 0x4db   :  { %v816_v51 = vadd.f32 %v884_v0, %v815_v50 }
 0x4dc   :  { %v1008_v52 = vpop.f32.mrf.mxu1 }
 0x4dd   :  { %v821_v53 = vpack.c.bf16 %v816_v51, %v816_v51 }
 0x4de   :  { %v818_v54 = vpop.f32.mrf.mxu1 }
 0x4df   :  { %823 = vst.msk [vmem:[%s1359_s13] sm:$0xf] %vm822_vm5, %v821_v53 }
 0x4e0   :  { %v1009_v55 = vpop.f32.mrf.mxu1 }
 0x4e1   :  { %828 = vsyncpa [#allocation3], 1 }
 0x4e2   :  { %829 = vsyncpa [#allocation5], 1 }

</bundles_post_ra>
